<compile_context>
chip_gen: v6e
topology: v6e:2x2x1
jax: 0.10.0
libtpu: 0.0.40
codegen_flags: <defaults>
</compile_context>

<pallas_src>
import jax
import jax.numpy as jnp
from jax import lax
from jax.experimental import pallas as pl
from jax.experimental.pallas import tpu as pltpu


def _round_up(x, m):
    return ((x + m - 1) // m) * m


def _vmem_capacity_bytes():
    """Physical VMEM per core (128 MiB v5e/v6e, 64 MiB v7x); conservative fallback."""
    try:
        info = pltpu.get_tpu_info()
        for name in ("vmem_capacity_bytes", "vmem_size_bytes", "vmem_bytes"):
            v = getattr(info, name, None)
            if v:
                return int(v)
    except Exception:
        pass
    return 64 * 2 ** 20


def _make_kernel(ns_chunk, nchunks, ddtype):
    unroll = nchunks <= 4

    def kernel(qp_ref, sp_ref, f_ref, o_ref):
        qp = qp_ref[0]                                    # (4, TQ) f32: x, y, z, valid
        tq = qp.shape[1]
        qx = qp[0:1, :].astype(ddtype)
        qy = qp[1:2, :].astype(ddtype)
        qz = qp[2:3, :].astype(ddtype)
        qvalid = qp[3:4, :]                               # (1, TQ) f32 (1/0)

        c_p = f_ref.shape[1]

        # Loop-invariant row iota, hoisted (JAX does not CSE broadcast_in_dim).
        row = lax.broadcasted_iota(jnp.int32, (ns_chunk, tq), 0)

        # -- pass 1: chunked online first-occurrence argmin over support points --
        def dist_body(c, carry):
            dmin, idx = carry
            start = pl.multiple_of(c * ns_chunk, ns_chunk)
            sp = sp_ref[0, pl.ds(start, ns_chunk), :].astype(ddtype)     # (chunk, 4)
            dx = sp[:, 0:1] - qx
            dy = sp[:, 1:2] - qy
            dz = sp[:, 2:3] - qz
            d2 = dx * dx + dy * dy + dz * dz                             # (chunk, TQ)
            cmin = jnp.min(d2, axis=0, keepdims=True)                    # (1, TQ)
            cidx = jnp.min(jnp.where(d2 == cmin, row, ns_chunk),
                           axis=0, keepdims=True) + c * ns_chunk         # (1, TQ)
            better = cmin < dmin          # strict '<' keeps first occurrence across chunks
            return jnp.where(better, cmin, dmin), jnp.where(better, cidx, idx)

        dmin0 = jnp.full((1, tq), 3.0e38, ddtype)
        idx0 = jnp.zeros((1, tq), jnp.int32)
        _, idx = lax.fori_loop(0, nchunks, dist_body, (dmin0, idx0), unroll=unroll)

        # Invalid query points keep index 0 (CUDA zero-init semantics).
        idx = jnp.where(qvalid > 0.0, idx, 0)

        # -- pass 2: chunked one-hot gather on the MXU, f32 accumulation ---------
        def gather_body(c, acc):
            start = pl.multiple_of(c * ns_chunk, ns_chunk)
            fchunk = f_ref[0, :, pl.ds(start, ns_chunk)]                 # (C_p, chunk)
            onehot = (row == (idx - c * ns_chunk)).astype(fchunk.dtype)  # (chunk, TQ)
            return acc + jnp.dot(fchunk, onehot,
                                 preferred_element_type=jnp.float32)

        acc0 = jnp.zeros((c_p, tq), jnp.float32)
        out = lax.fori_loop(0, nchunks, gather_body, acc0, unroll=unroll)
        o_ref[0] = out.astype(o_ref.dtype)

    return kernel


def masked_upsample_nearest(up_xyz, xyz, up_mask, mask, features, *,
                            tq=None, ns_chunk=512, distance_dtype=None):
    """up_xyz (B,Nq,3), xyz (B,Ns,3), up_mask (B,Nq) bool, mask (B,Ns) bool,
    features (B,C,Ns)  ->  up_feature (B,C,Nq) in features.dtype."""
    B, Nq, _ = up_xyz.shape
    _, Ns, _ = xyz.shape
    C = features.shape[1]
    fdtype = features.dtype
    fbytes = jnp.dtype(fdtype).itemsize
    ddtype = jnp.float32 if distance_dtype is None else jnp.dtype(distance_dtype)

    vmem_cap = _vmem_capacity_bytes()

    # Generation-aware query tile: 512 on 128 MiB VMEM chips (v5e/v6e), 256 on v7x.
    if tq is None:
        tq = 512 if vmem_cap >= 96 * 2 ** 20 else 256

    TQ = max(128, _round_up(min(tq, _round_up(Nq, 128)), 128))
    Nq_p = _round_up(Nq, TQ)

    # Support padding / in-kernel chunking along Ns.
    Ns_p = _round_up(Ns, 128)
    if Ns_p <= ns_chunk:
        NS_CHUNK = Ns_p
    else:
        NS_CHUNK = _round_up(ns_chunk, 128)
        Ns_p = _round_up(Ns_p, NS_CHUNK)
    nchunks = Ns_p // NS_CHUNK

    c_mult = 8 if fbytes >= 4 else 16
    C_p = _round_up(C, c_mult)

    # Packed query stream (B, 4, Nq_p): rows x, y, z, valid; padded queries invalid.
    q_t = jnp.transpose(up_xyz.astype(jnp.float32), (0, 2, 1))            # (B, 3, Nq)
    qvalid = up_mask.astype(jnp.float32).reshape(B, 1, Nq)
    qpack = jnp.concatenate([q_t, qvalid], axis=1)                        # (B, 4, Nq)
    qpack = jnp.pad(qpack, ((0, 0), (0, 0), (0, Nq_p - Nq)))

    # Support coords with coordinate sentinel (replaces the penalty add): invalid
    # and padded points are moved to ~1e18 so their squared distance (~1e36) can
    # never win, yet stays finite in f32/bf16. 4th column is unused layout pad.
    sentinel = jnp.asarray([1e18, 0.0, 0.0], jnp.float32)
    sp = jnp.where(mask[:, :, None], xyz.astype(jnp.float32), sentinel)   # (B, Ns, 3)
    spack = jnp.pad(sp, ((0, 0), (0, Ns_p - Ns), (0, 1)),
                    constant_values=1e18)                                 # (B, Ns_p, 4)

    # Features stay in their upstream dtype (0/1 one-hot selection is exact).
    f_p = jnp.pad(features, ((0, 0), (0, C_p - C), (0, Ns_p - Ns)))       # (B, C_p, Ns_p)

    # VMEM budget: resident blocks single-buffered, streamed blocks double-buffered,
    # temporaries bounded by the Ns chunking. Capped at ~87% of physical VMEM so
    # Mosaic keeps headroom for internal scratch.
    est = (
        512 * Ns_p                      # support pack (lane-padded (Ns_p,4)) x1 buf
        + C_p * Ns_p * fbytes           # resident features x1 buf
        + 2 * 32 * TQ                   # query tile x2 bufs
        + 2 * C_p * TQ * fbytes         # output tile x2 bufs
        + 6 * NS_CHUNK * TQ * 4         # distance / argmin / one-hot temporaries
        + 2 * C_p * TQ * 4              # f32 gather accumulator + slack
    )
    vmem_limit = int(min(max(int(1.5 * est), 32 * 2 ** 20),
                         int(0.875 * vmem_cap)))

    kernel = _make_kernel(NS_CHUNK, nchunks, ddtype)

    out_padded = pl.pallas_call(
        kernel,
        out_shape=jax.ShapeDtypeStruct((B, C_p, Nq_p), fdtype),
        grid_spec=pltpu.PrefetchScalarGridSpec(
            num_scalar_prefetch=0,
            grid=(B, Nq_p // TQ),
            in_specs=[
                # streamed per query tile (default double buffering)
                pl.BlockSpec((1, 4, TQ), lambda b, i: (b, 0, i)),
                # per-batch resident blocks: single-buffered (block index only
                # changes at batch boundaries; saves C_p*Ns_p*fbytes + 512*Ns_p
                # of VMEM at the cost of one un-overlapped DMA per batch)
                pl.BlockSpec((1, Ns_p, 4), lambda b, i: (b, 0, 0),
                             pipeline_mode=pl.Buffered(1)),
                pl.BlockSpec((1, C_p, Ns_p), lambda b, i: (b, 0, 0),
                             pipeline_mode=pl.Buffered(1)),
            ],
            out_specs=pl.BlockSpec((1, C_p, TQ), lambda b, i: (b, 0, i)),
        ),
        compiler_params=pltpu.CompilerParams(
            dimension_semantics=("parallel", "parallel"),
            vmem_limit_bytes=vmem_limit,
        ),
    )(qpack, spack, f_p)

    return out_padded[:, :C, :Nq]


def _reference(up_xyz, xyz, up_mask, mask, features):
    # Pure-JAX reference of MaskedUpsample(mode='nearest').forward
    d2 = jnp.sum((up_xyz[:, :, None, :] - xyz[:, None, :, :]) ** 2, axis=-1)  # (B,Nq,Ns)
    d2 = jnp.where(mask[:, None, :], d2, jnp.inf)
    idx = jnp.argmin(d2, axis=-1)                                             # (B, Nq)
    idx = jnp.where(up_mask, idx, 0)
    return jnp.take_along_axis(features, idx[:, None, :], axis=2)             # (B, C, Nq)


if __name__ == "__main__":
    key = jax.random.PRNGKey(0)

    def run_case(case_id, B, C, Nq, Ns, fdtype, ns_valid_b1=None, ns_chunk=512):
        k1, k2, k3 = jax.random.split(jax.random.fold_in(key, case_id), 3)
        up_xyz = jax.random.normal(k1, (B, Nq, 3), jnp.float32)      # fine points
        xyz = jax.random.normal(k2, (B, Ns, 3), jnp.float32)         # coarse points
        features = jax.random.normal(k3, (B, C, Ns), jnp.float32).astype(fdtype)

        # deterministic validity masks (some invalid points in batch 1)
        q_lim = [Nq] * B
        s_lim = [Ns] * B
        if B > 1:
            q_lim[1] = Nq - Nq // 4
            s_lim[1] = (Ns - Ns // 4) if ns_valid_b1 is None else ns_valid_b1
        up_mask = jnp.arange(Nq)[None, :] < jnp.asarray(q_lim)[:, None]
        mask = jnp.arange(Ns)[None, :] < jnp.asarray(s_lim)[:, None]

        out = masked_upsample_nearest(up_xyz, xyz, up_mask, mask, features,
                                      ns_chunk=ns_chunk)
        out = jax.block_until_ready(out)

        ref = _reference(up_xyz, xyz, up_mask, mask, features)
        assert out.shape == (B, C, Nq), f"case {case_id}: bad shape {out.shape}"
        assert out.dtype == features.dtype, f"case {case_id}: bad dtype {out.dtype}"
        assert jnp.allclose(out.astype(jnp.float32), ref.astype(jnp.float32),
                            atol=1e-5), f"case {case_id}: mismatch vs reference"

    run_case(0, B=2, C=8, Nq=32, Ns=16, fdtype=jnp.float32)    # aligned-ish, 1 chunk
    run_case(1, B=2, C=5, Nq=40, Ns=20, fdtype=jnp.float32)    # C/Nq/Ns padding
    run_case(2, B=2, C=8, Nq=32, Ns=16, fdtype=jnp.bfloat16)   # bf16 gather-matmul path
    run_case(3, B=2, C=8, Nq=32, Ns=16, fdtype=jnp.float32,
             ns_valid_b1=0)                                    # all-invalid support batch
    run_case(4, B=2, C=6, Nq=48, Ns=300, fdtype=jnp.float32,
             ns_chunk=128)                                     # multi-chunk (unrolled)
    run_case(5, B=1, C=8, Nq=40, Ns=650, fdtype=jnp.float32,
             ns_chunk=128)                                     # multi-chunk (rolled loop)
    print("KERNEL_OK")
</pallas_src>

<mosaic_0001>
module attributes {stable_mosaic.version = 11 : i64} {
  func.func @kernel(%arg0: i32, %arg1: i32, %arg2: memref<1x4x128xf32, #tpu.memory_space<vmem>>, %arg3: memref<1x128x4xf32, #tpu.memory_space<vmem>>, %arg4: memref<1x8x128xf32, #tpu.memory_space<vmem>>, %arg5: memref<1x8x128xf32, #tpu.memory_space<vmem>>) attributes {dimension_semantics = [#tpu.dimension_semantics<parallel>, #tpu.dimension_semantics<parallel>], iteration_bounds = array<i64: 2, 1>, scalar_prefetch = 0 : i64, scratch_operands = 0 : i64, tpu.core_type = #tpu.core_type<tc>, window_params = [{transform_indices = @transform_0, window_bounds = array<i64: 1, 4, 128>}, {pipeline_mode = #tpu.pipeline_mode<synchronous>, transform_indices = @transform_1, window_bounds = array<i64: 1, 128, 4>}, {pipeline_mode = #tpu.pipeline_mode<synchronous>, transform_indices = @transform_2, window_bounds = array<i64: 1, 8, 128>}, {transform_indices = @transform_3, window_bounds = array<i64: 1, 8, 128>}]} {
    %c0 = arith.constant 0 : index
    %c0_0 = arith.constant 0 : index
    %c0_1 = arith.constant 0 : index
    %0 = vector.load %arg2[%c0, %c0_0, %c0_1] : memref<1x4x128xf32, #tpu.memory_space<vmem>>, vector<1x4x128xf32>
    %1 = vector.shape_cast %0 : vector<1x4x128xf32> to vector<4x128xf32>
    %2 = vector.extract_strided_slice %1 {offsets = [0, 0], sizes = [1, 128], strides = [1, 1]} : vector<4x128xf32> to vector<1x128xf32>
    %3 = vector.extract_strided_slice %1 {offsets = [1, 0], sizes = [1, 128], strides = [1, 1]} : vector<4x128xf32> to vector<1x128xf32>
    %4 = vector.extract_strided_slice %1 {offsets = [2, 0], sizes = [1, 128], strides = [1, 1]} : vector<4x128xf32> to vector<1x128xf32>
    %5 = vector.extract_strided_slice %1 {offsets = [3, 0], sizes = [1, 128], strides = [1, 1]} : vector<4x128xf32> to vector<1x128xf32>
    %6 = tpu.iota {dimensions = array<i32: 0>} : vector<128x128xi32>
    %cst = arith.constant 3.000000e+38 : f32
    %7 = vector.broadcast %cst : f32 to vector<1x128xf32>
    %c0_i32 = arith.constant 0 : i32
    %8 = vector.broadcast %c0_i32 : i32 to vector<1x128xi32>
    %c0_i32_2 = arith.constant 0 : i32
    %c128_i32 = arith.constant 128 : i32
    %9 = arith.muli %c0_i32_2, %c128_i32 : i32
    %10 = tpu.assume_multiple %9, 128 : i32
    %c0_3 = arith.constant 0 : index
    %11 = arith.index_cast %10 : i32 to index
    %c0_4 = arith.constant 0 : index
    %12 = vector.load %arg3[%c0_3, %11, %c0_4] : memref<1x128x4xf32, #tpu.memory_space<vmem>>, vector<1x128x4xf32>
    %13 = vector.shape_cast %12 : vector<1x128x4xf32> to vector<128x4xf32>
    %14 = vector.extract_strided_slice %13 {offsets = [0, 0], sizes = [128, 1], strides = [1, 1]} : vector<128x4xf32> to vector<128x1xf32>
    %15 = vector.broadcast %14 : vector<128x1xf32> to vector<128x128xf32>
    %16 = vector.broadcast %2 : vector<1x128xf32> to vector<128x128xf32>
    %17 = arith.subf %15, %16 : vector<128x128xf32>
    %18 = vector.extract_strided_slice %13 {offsets = [0, 1], sizes = [128, 1], strides = [1, 1]} : vector<128x4xf32> to vector<128x1xf32>
    %19 = vector.broadcast %18 : vector<128x1xf32> to vector<128x128xf32>
    %20 = vector.broadcast %3 : vector<1x128xf32> to vector<128x128xf32>
    %21 = arith.subf %19, %20 : vector<128x128xf32>
    %22 = vector.extract_strided_slice %13 {offsets = [0, 2], sizes = [128, 1], strides = [1, 1]} : vector<128x4xf32> to vector<128x1xf32>
    %23 = vector.broadcast %22 : vector<128x1xf32> to vector<128x128xf32>
    %24 = vector.broadcast %4 : vector<1x128xf32> to vector<128x128xf32>
    %25 = arith.subf %23, %24 : vector<128x128xf32>
    %26 = arith.mulf %17, %17 : vector<128x128xf32>
    %27 = arith.mulf %21, %21 : vector<128x128xf32>
    %28 = arith.addf %26, %27 : vector<128x128xf32>
    %29 = arith.mulf %25, %25 : vector<128x128xf32>
    %30 = arith.addf %28, %29 : vector<128x128xf32>
    %cst_5 = arith.constant dense<0x7F800000> : vector<128xf32>
    %31 = vector.multi_reduction <minimumf>, %30, %cst_5 [0] : vector<128x128xf32> to vector<128xf32>
    %32 = vector.shape_cast %31 : vector<128xf32> to vector<1x128xf32>
    %33 = vector.broadcast %32 : vector<1x128xf32> to vector<128x128xf32>
    %34 = arith.cmpf oeq, %30, %33 : vector<128x128xf32>
    %c128_i32_6 = arith.constant 128 : i32
    %35 = vector.broadcast %c128_i32_6 : i32 to vector<128x128xi32>
    %36 = arith.select %34, %6, %35 : vector<128x128xi1>, vector<128x128xi32>
    %cst_7 = arith.constant dense<2147483647> : vector<128xi32>
    %37 = vector.multi_reduction <minsi>, %36, %cst_7 [0] : vector<128x128xi32> to vector<128xi32>
    %38 = vector.shape_cast %37 : vector<128xi32> to vector<1x128xi32>
    %c128_i32_8 = arith.constant 128 : i32
    %39 = arith.muli %c0_i32_2, %c128_i32_8 : i32
    %40 = vector.broadcast %39 : i32 to vector<1x128xi32>
    %41 = arith.addi %38, %40 : vector<1x128xi32>
    %42 = arith.cmpf olt, %32, %7 : vector<1x128xf32>
    %43 = arith.select %42, %32, %7 : vector<1x128xi1>, vector<1x128xf32>
    %44 = arith.select %42, %41, %8 : vector<1x128xi1>, vector<1x128xi32>
    %c1_i32 = arith.constant 1 : i32
    %cst_9 = arith.constant 0.000000e+00 : f32
    %45 = vector.broadcast %cst_9 : f32 to vector<1x128xf32>
    %46 = arith.cmpf ogt, %5, %45 : vector<1x128xf32>
    %c0_i32_10 = arith.constant 0 : i32
    %47 = vector.broadcast %c0_i32_10 : i32 to vector<1x128xi32>
    %48 = arith.select %46, %44, %47 : vector<1x128xi1>, vector<1x128xi32>
    %cst_11 = arith.constant 0.000000e+00 : f32
    %49 = vector.broadcast %cst_11 : f32 to vector<8x128xf32>
    %c0_i32_12 = arith.constant 0 : i32
    %c128_i32_13 = arith.constant 128 : i32
    %50 = arith.muli %c0_i32_12, %c128_i32_13 : i32
    %51 = tpu.assume_multiple %50, 128 : i32
    %c0_14 = arith.constant 0 : index
    %c0_15 = arith.constant 0 : index
    %52 = arith.index_cast %51 : i32 to index
    %53 = vector.load %arg4[%c0_14, %c0_15, %52] : memref<1x8x128xf32, #tpu.memory_space<vmem>>, vector<1x8x128xf32>
    %54 = vector.shape_cast %53 : vector<1x8x128xf32> to vector<8x128xf32>
    %c128_i32_16 = arith.constant 128 : i32
    %55 = arith.muli %c0_i32_12, %c128_i32_16 : i32
    %56 = vector.broadcast %55 : i32 to vector<1x128xi32>
    %57 = arith.subi %48, %56 : vector<1x128xi32>
    %58 = vector.broadcast %57 : vector<1x128xi32> to vector<128x128xi32>
    %59 = arith.cmpi eq, %6, %58 : vector<128x128xi32>
    %60 = arith.extui %59 : vector<128x128xi1> to vector<128x128xi32>
    %61 = arith.sitofp %60 : vector<128x128xi32> to vector<128x128xf32>
    %cst_17 = arith.constant dense<0.000000e+00> : vector<8x128xf32>
    %62 = tpu.matmul %54, %61, %cst_17 {dimension_numbers = #tpu.dot_dimension_numbers<[1], [0], [0], [1], [0, 0, 1, 1], [], []>} : vector<8x128xf32>, vector<128x128xf32>, vector<8x128xf32> -> vector<8x128xf32>
    %63 = arith.addf %49, %62 : vector<8x128xf32>
    %c1_i32_18 = arith.constant 1 : i32
    %c0_19 = arith.constant 0 : index
    %c0_20 = arith.constant 0 : index
    %c0_21 = arith.constant 0 : index
    %64 = vector.load %arg5[%c0_19, %c0_20, %c0_21] : memref<1x8x128xf32, #tpu.memory_space<vmem>>, vector<1x8x128xf32>
    %65 = vector.shape_cast %64 : vector<1x8x128xf32> to vector<8x128xf32>
    %66 = vector.shape_cast %63 : vector<8x128xf32> to vector<1x8x128xf32>
    tpu.vector_store %arg5[%c0_19, %c0_20, %c0_21], %66 {strides = array<i32>} : memref<1x8x128xf32, #tpu.memory_space<vmem>>, vector<1x8x128xf32>,
    return
  }
  func.func @transform_0(%arg0: i32, %arg1: i32) -> (i32, i32, i32) {
    %c0_i32 = arith.constant 0 : i32
    %c0_i32_0 = arith.constant 0 : i32
    return %arg0, %c0_i32, %arg1 : i32, i32, i32
  }
  func.func @transform_1(%arg0: i32, %arg1: i32) -> (i32, i32, i32) {
    %c0_i32 = arith.constant 0 : i32
    %c0_i32_0 = arith.constant 0 : i32
    %c0_i32_1 = arith.constant 0 : i32
    return %arg0, %c0_i32, %c0_i32_0 : i32, i32, i32
  }
  func.func @transform_2(%arg0: i32, %arg1: i32) -> (i32, i32, i32) {
    %c0_i32 = arith.constant 0 : i32
    %c0_i32_0 = arith.constant 0 : i32
    %c0_i32_1 = arith.constant 0 : i32
    return %arg0, %c0_i32, %c0_i32_0 : i32, i32, i32
  }
  func.func @transform_3(%arg0: i32, %arg1: i32) -> (i32, i32, i32) {
    %c0_i32 = arith.constant 0 : i32
    %c0_i32_0 = arith.constant 0 : i32
    return %arg0, %c0_i32, %arg1 : i32, i32, i32
  }
}

</mosaic_0001>

<bundles_post_ra>
// kernel: tpu_custom_call.1
= control target key start
LH: loop header
LB: loop body
LE: loop exit
PB: predicated region body
PF: predicated region fallthrough
CT: control target
= control target key end

     0   :  { %8 = vsyncpa [#allocation3], 0  ;;  %s1674_s0 = inlined_call_operand.vmem [shape: f32[2,4,128], index: 0, kind: input, shape index: {}]   ;;  %s1675_s1 = inlined_call_operand.vmem [shape: f32[2,128,4], index: 1, kind: input, shape index: {}]   ;;  %s1676_s2 = inlined_call_operand.vmem [shape: f32[2,8,128], index: 2, kind: input, shape index: {}]   ;;  %s1677_s3 = inlined_call_operand.hbm [shape: f32[2,8,128], index: 3, kind: output, shape index: {}]  }
   0x1   :  { %10 = vsyncpa [#allocation3 + $0x1], 0  ;;  %s1222_s12 = smov 0   ;;  %s1224_s13 = smov 0  }
   0x2   :  { %s1226_s14 = smov 0   ;;  %s1228_s15 = smov 0  }
   0x3   :  { %s1230_s16 = smov 0   ;;  %s1232_s17 = smov 0  }
   0x4 LB: > { %s946_s18 = sadd.s32 4294967295, %s1193_s17   ;;  %s947_s19 = sadd.s32 4294967294, %s1193_s17   ;;  %s1193_s17 = sphi %s1232_s17, %s16_s17   ;;  %s1189_s16 = sphi %s1230_s16, %s1684_s16   ;;  %s1185_s15 = sphi %s1228_s15, %s1683_s15   ;;  %s1181_s14 = sphi %s1226_s14, %s1682_s14   ;;  %s1177_s13 = sphi %s1224_s13, %s1681_s13   ;;  %s1173_s12 = sphi %s1222_s12, %s1680_s12  }
   0x5   : > { %s28_s20 = sadd.s32 1, %s1189_s16  ;;  %s117_s21 = sadd.s32 1, %s1181_s14 }
   0x6   : > { %p30_p0 = scmp.ge.s32.totalorder %s28_s20, 2  ;;  %p127_p1 = scmp.ne.s32.totalorder %s1181_s14, %s1177_s13 }
   0x7   : > { %p128_p2 = scmp.eq.s32.totalorder %s946_s18, 1  ;;  %p133_p3 = scmp.ne.s32.totalorder %s1177_s13, %s1173_s12 }
   0x8   : > { %s1686_s20 = smov (%p30_p0, %s28_s20), 0  ;;  %p134_p5 = scmp.eq.s32.totalorder %s947_s19, 1 }
   0x9   : > { %p1262_p4 = por %p128_p2, %p127_p1  ;;  %s112_s23 = ssub.s32 %s1189_s16, %s1686_s20 }
   0xa   : > { %p950_p6 = scmp.ge.s32.totalorder %s1193_s17, 1  ;;  %p115_p7 = scmp.eq.s32.totalorder %s112_s23, 0 }
   0xb   : > { %p1269_p8 = por %p134_p5, %p133_p3  ;;  %p177_p9 = scmp.lt.s32.totalorder %s1193_s17, 3 }
   0xc   : > { %s1275_s25 = scalar_select %p115_p7, %s1181_s14, %s117_s21  }
   0xd   : > { %p178_p10 = pnand %p950_p6, %p177_p9 }
   0xe   : > { %p212_p11 = scmp.lt.s32.totalorder (!%p178_p10), %s1185_s15, 1  ;;  %s209_s18 = sand.u32 (!%p178_p10), 1, %s1177_s13  }
   0xf   : > { %181 = sbr.rel (%p178_p10) target bundleno = 558 (0x22e), region = 32  ;;  %s951_s19 = sshll.u32 (!%p178_p10), %s209_s18, 3 }
  0x10   : > { %s211_s21 = scalar_lea.vmem (!%p178_p10), [#allocation2], %s951_s19 }
  0x11   : > { %s845_s23 = sshll.u32 (!%p178_p10), %s211_s21, 4  ;;  %s1625_s23 = int_to_ptr.vmem [resolvable:$true] %s845_s23 }
  0x14   : > { %v1195_v0 = vmov 0   ;;  %s1281_s26 = scalar_select %p212_p11, %s1185_s15, 1  ;;  %v1196_v10 = vmov 1   ;;  %v1197_v17 = vmov 2   ;;  %v229_v19 = vlaneseq }
  0x15   : > { %1107 = vset.pattern.permute.xlu1 %v1195_v0  ;;  %1106 = vset.pattern.permute.xlu0 %v1195_v0  ;;  %v1198_v36 = vmov 0.0   ;;  %vm1199_vm0 = vmmov 0  }
  0x16   : > { %s992_s27 = sshll.u32 %s1281_s26, 7  ;;  %s952_s4 = sshll.u32 %s1281_s26, 2  ;;  %v1308_v22 = vshrl.u32 %v229_v19, 7  ;;  %1010 = vmatprep.subr.mxu0 %v1198_v36  ;;  %1042 = vmatprep.mubr.msk.f32.mxu0 %vm1199_vm0, %v1198_v36 }
  0x17   : > { %s1287_s30 = scalar_lea.vmem %s1675_s1, %s992_s27  ;;  %s218_s7 = scalar_lea.vmem %s1674_s0, %s952_s4 }
  0x18   : > { %v248_v1 = vld [vmem:[%s1287_s30 + $0x10] sm:$0xff]  ;;  %v246_v2 = vld [vmem:[%s1287_s30] sm:$0xff]  ;;  %v249_v3 = vld [vmem:[%s1287_s30 + $0x18] sm:$0xff]  ;;  %v344_v25 = vsub.s32 0, %v1308_v22  ;;  %v428_v29 = vsub.s32 1, %v1308_v22  ;;  %s955_s8 = sshll.u32 %s1281_s26, 3 }
  0x19   : > { %274 = vperm.xlu1 %1107, %v248_v1   ;;  %264 = vperm.xlu0 %1106, %v246_v2   ;;  %v247_v4 = vld [vmem:[%s1287_s30 + $0x8] sm:$0xff]  ;;  %v250_v6 = vld [vmem:[%s1287_s30 + $0x20] sm:$0xff]  ;;  %v253_v7 = vld [vmem:[%s1287_s30 + $0x38] sm:$0xff]  ;;  %s227_s11 = scalar_lea.vmem %s1676_s2, %s955_s8  ;;  %s989_s26 = sshll.u32 %s1185_s15, 7 }
  0x1a   : > { %v251_v5 = vld [vmem:[%s1287_s30 + $0x28] sm:$0xff]  ;;  %v252_v8 = vld [vmem:[%s1287_s30 + $0x30] sm:$0xff]  ;;  %v258_v11 = vld [vmem:[%s1287_s30 + $0x60] sm:$0xff]  ;;  %s1630_s29 = scalar_lea.hbm %s1677_s3, %s989_s26  ;;  %s1117_s4 = scalar_lea.vmem %s1625_s23, 128 }
  0x1b   : > { %v255_v9 = vld [vmem:[%s1287_s30 + $0x48] sm:$0xff]  ;;  %v261_v12 = vld [vmem:[%s1287_s30 + $0x78] sm:$0xff]  ;;  %v254_v13 = vld [vmem:[%s1287_s30 + $0x40] sm:$0xff]  ;;  %p1118_p12 = scmp.ne.s32.totalorder %s1625_s23, %s1117_s4  ;;  %s1201_s15 = smov [#allocation2]  }
  0x1c   : > { %v256_v14 = vld [vmem:[%s1287_s30 + $0x50] sm:$0xff]  ;;  %v257_v15 = vld [vmem:[%s1287_s30 + $0x58] sm:$0xff]  ;;  %v259_v16 = vld [vmem:[%s1287_s30 + $0x68] sm:$0xff]  ;;  %s1121_s5 = sshll.u32 %s1201_s15, 4  ;;  %s1122_s5 = int_to_ptr.vmem [resolvable:$false] %s1121_s5 }
  0x1d   : > { %279 = vperm.xlu1 %1107, %v249_v3   ;;  %269 = vperm.xlu0 %1106, %v247_v4   ;;  %v260_v18 = vld [vmem:[%s1287_s30 + $0x70] sm:$0xff]  ;;  %v1314_v28 = vld [vmem:[%s218_s7] sm:$0xf]  ;;  %s831_s30 = scalar_lea.sflag [#allocation3], %s209_s18  ;;  %p1119_p13 = pnand %p1118_p12, %p1262_p4 }
  0x1e   : > { %v1318_v30 = vrot.slane %v1314_v28, %v344_v25  ;;  %v1324_v34 = vrot.slane %v1314_v28, %v428_v29  ;;  %s1123_s6 = scalar_lea.vmem %s1122_s5, 256  ;;  %p1124_p1 = scmp.lt.s32.totalorder %s1625_s23, %s1122_s5 }
  0x1f   : > { %p1120_p0 = pneg %p1119_p13  ;;  %p1125_p2 = scmp.lt.s32.totalorder %s1123_s6, %s1117_s4 }
  0x21   : > { %289 = vperm.xlu1 %1107, %v251_v5   ;;  %284 = vperm.xlu0 %1106, %v250_v6   ;;  %p1126_p3 = por %p1125_p2, %p1124_p1 }
  0x23   : > { %p1127_p5 = pnand %p1126_p3, %p1120_p0 }
  0x25   : > { %299 = vperm.xlu1 %1107, %v253_v7   ;;  %294 = vperm.xlu0 %1106, %v252_v8  }
  0x29   : > { %1108 = vset.pattern.permute.xlu1 %v1196_v10  ;;  %309 = vperm.xlu0 %1106, %v255_v9  }
  0x2a   : > { %367 = vperm.xlu1 %1108, %v247_v4  }
  0x2d   : > { %324 = vperm.xlu0 %1106, %v258_v11  }
  0x2e   : > { %371 = vperm.xlu1 %1108, %v248_v1  }
  0x31   : > { %339 = vperm.xlu0 %1106, %v261_v12  }
  0x32   : > { %379 = vperm.xlu1 %1108, %v250_v6  }
  0x35   : > { %1113 = vset.pattern.permute.xlu0 %v1196_v10 }
  0x36   : > { %387 = vperm.xlu1 %1108, %v252_v8   ;;  %363 = vperm.xlu0 %1113, %v246_v2  }
  0x3a   : > { %1109 = vset.pattern.permute.xlu1 %v1195_v0  ;;  %375 = vperm.xlu0 %1113, %v249_v3  }
  0x3b   : > { %304 = vperm.xlu1 %1109, %v254_v13  }
  0x3e   : > { %383 = vperm.xlu0 %1113, %v251_v5  }
  0x3f   : > { %314 = vperm.xlu1 %1109, %v256_v14  }
  0x42   : > { %391 = vperm.xlu0 %1113, %v253_v7  }
  0x43   : > { %319 = vperm.xlu1 %1109, %v257_v15  }
  0x46   : > { %395 = vperm.xlu0 %1113, %v254_v13  }
  0x47   : > { %1110 = vset.pattern.permute.xlu1 %v1196_v10 }
  0x48   : > { %399 = vperm.xlu1 %1110, %v255_v9  }
  0x4a   : > { %407 = vperm.xlu0 %1113, %v257_v15  }
  0x4c   : > { %403 = vperm.xlu1 %1110, %v256_v14  }
  0x4e   : > { %415 = vperm.xlu0 %1113, %v259_v16  }
  0x50   : > { %1111 = vset.pattern.permute.xlu1 %v1197_v17 }
  0x51   : > { %447 = vperm.xlu1 %1111, %v246_v2  }
  0x52   : > { %1115 = vset.pattern.permute.xlu0 %v1197_v17 }
  0x53   : > { %451 = vperm.xlu0 %1115, %v247_v4   ;;  %v512_v4 = vsub.s32 2, %v1308_v22 }
  0x55   : > { %455 = vperm.xlu1 %1111, %v248_v1  }
  0x57   : > { %463 = vperm.xlu0 %1115, %v250_v6   ;;  %v1356_v6 = vrot.slane %v1314_v28, %v512_v4 }
  0x59   : > { %459 = vperm.xlu1 %1111, %v249_v3  }
  0x5b   : > { %471 = vperm.xlu0 %1115, %v252_v8  }
  0x5d   : > { %467 = vperm.xlu1 %1111, %v251_v5  }
  0x5f   : > { %479 = vperm.xlu0 %1115, %v254_v13  }
  0x61   : > { %475 = vperm.xlu1 %1111, %v253_v7  }
  0x63   : > { %491 = vperm.xlu0 %1115, %v257_v15  }
  0x65   : > { %1112 = vset.pattern.permute.xlu1 %v1195_v0 }
  0x66   : > { %329 = vperm.xlu1 %1112, %v259_v16  }
  0x67   : > { %499 = vperm.xlu0 %1115, %v259_v16  }
  0x6a   : > { %334 = vperm.xlu1 %1112, %v260_v18  }
  0x6b   : > { %507 = vperm.xlu0 %1115, %v261_v12  }
  0x6e   : > { %1114 = vset.pattern.permute.xlu1 %v1196_v10 }
  0x6f   : > { %411 = vperm.xlu1 %1114, %v258_v11  }
  0x73   : > { %419 = vperm.xlu1 %1114, %v260_v18  }
  0x77   : > { %423 = vperm.xlu1 %1114, %v261_v12  }
  0x7b   : > { %1116 = vset.pattern.permute.xlu1 %v1197_v17 }
  0x7c   : > { %483 = vperm.xlu1 %1116, %v255_v9  }
  0x80   : > { %487 = vperm.xlu1 %1116, %v256_v14  }
  0x84   : > { %495 = vperm.xlu1 %1116, %v258_v11  }
  0x88   : > { %503 = vperm.xlu1 %1116, %v260_v18  }
  0x94   : > { %v275_v20 = vpop.permute.xlu1 %274  ;;  %v265_v21 = vpop.permute.xlu0 %264 }
  0x95   : > { %v348_v40 = vsub.f32 %v275_v20, %v1318_v30  ;;  %v346_v8 = vsub.f32 %v265_v21, %v1318_v30 }
  0x97   : > { %v532_v47 = vmul.f32 %v348_v40, %v348_v40  ;;  %v530_v15 = vmul.f32 %v346_v8, %v346_v8 }
  0x98   : > { %v280_v23 = vpop.permute.xlu1 %279  ;;  %v270_v24 = vpop.permute.xlu0 %269 }
  0x99   : > { %v347_v33 = vsub.f32 %v270_v24, %v1318_v30  ;;  %v349_v12 = vsub.f32 %v280_v23, %v1318_v30 }
  0x9b   : > { %v531_v38 = vmul.f32 %v347_v33, %v347_v33 }
  0x9c   : > { %v290_v26 = vpop.permute.xlu1 %289  ;;  %v285_v27 = vpop.permute.xlu0 %284 }
  0x9d   : > { %v350_v44 = vsub.f32 %v285_v27, %v1318_v30  ;;  %v351_v13 = vsub.f32 %v290_v26, %v1318_v30  ;;  %v533_v27 = vmul.f32 %v349_v12, %v349_v12 }
  0x9f   : > { %v534_v51 = vmul.f32 %v350_v44, %v350_v44  ;;  %v535_v29 = vmul.f32 %v351_v13, %v351_v13 }
  0xa0   : > { %v1320_v31 = vpop.permute.xlu1 %299  ;;  %v295_v32 = vpop.permute.xlu0 %294 }
  0xa1   : > { %v352_v16 = vsub.f32 %v295_v32, %v1318_v30 }
  0xa4   : > { %v1326_v35 = vpop.permute.xlu0 %309 }
  0xa5   : > { %v368_v37 = vpop.permute.xlu1 %367 }
  0xa6   : > { %v431_v39 = vsub.f32 %v368_v37, %v1324_v34  ;;  %v536_v37 = vmul.f32 %v352_v16, %v352_v16 }
  0xa8   : > { %v547_v41 = vmul.f32 %v431_v39, %v431_v39  ;;  %v1331_v42 = vpop.permute.xlu0 %324 }
  0xa9   : > { %v372_v43 = vpop.permute.xlu1 %371 }
  0xaa   : > { %v1334_v45 = vadd.f32 %v547_v41, %v531_v38  ;;  %v432_v46 = vsub.f32 %v372_v43, %v1324_v34 }
  0xac   : > { %v548_v48 = vmul.f32 %v432_v46, %v432_v46  ;;  %v1337_v49 = vpop.permute.xlu0 %339 }
  0xad   : > { %v380_v50 = vpop.permute.xlu1 %379 }
  0xae   : > { %v1339_v52 = vadd.f32 %v548_v48, %v532_v47  ;;  %v434_v53 = vsub.f32 %v380_v50, %v1324_v34 }
  0xb0   : > { %v550_v54 = vmul.f32 %v434_v53, %v434_v53  ;;  %v353_v53 = vsub.f32 %v1320_v31, %v1318_v30 }
  0xb1   : > { %v388_v55 = vpop.permute.xlu1 %387  ;;  %v364_v56 = vpop.permute.xlu0 %363 }
  0xb2   : > { %v566_v57 = vadd.f32 %v550_v54, %v534_v51  ;;  %v430_v9 = vsub.f32 %v364_v56, %v1324_v34  ;;  %v436_v17 = vsub.f32 %v388_v55, %v1324_v34  ;;  %v537_v13 = vmul.f32 %v353_v53, %v353_v53 }
  0xb4   : > { %v546_v18 = vmul.f32 %v430_v9, %v430_v9  ;;  %v552_v32 = vmul.f32 %v436_v17, %v436_v17 }
  0xb5   : > { %v376_v58 = vpop.permute.xlu0 %375 }
  0xb6   : > { %v305_v59 = vpop.permute.xlu1 %304  ;;  %v562_v38 = vadd.f32 %v546_v18, %v530_v15  ;;  %v433_v40 = vsub.f32 %v376_v58, %v1324_v34 }
  0xb7   : > { %v354_v41 = vsub.f32 %v305_v59, %v1318_v30  ;;  %v568_v59 = vadd.f32 %v552_v32, %v536_v37 }
  0xb8   : > { %v549_v4 = vmul.f32 %v433_v40, %v433_v40 }
  0xb9   : > { %v384_v60 = vpop.permute.xlu0 %383 }
  0xba   : > { %v1342_v61 = vpop.permute.xlu1 %314  ;;  %v435_v19 = vsub.f32 %v384_v60, %v1324_v34 }
  0xbc   : > { %v551_v43 = vmul.f32 %v435_v19, %v435_v19 }
  0xbd   : > { %v392_v62 = vpop.permute.xlu0 %391 }
  0xbe   : > { %v1344_v63 = vpop.permute.xlu1 %319  ;;  %v437_v44 = vsub.f32 %v392_v62, %v1324_v34 }
  0xc0   : > { %v553_v8 = vmul.f32 %v437_v44, %v437_v44  ;;  %v355_v44 = vsub.f32 %v1326_v35, %v1318_v30 }
  0xc1   : > { %v396_v0 = vpop.permute.xlu0 %395 }
  0xc2   : > { %v438_v23 = vsub.f32 %v396_v0, %v1324_v34  ;;  %v539_v35 = vmul.f32 %v355_v44, %v355_v44 }
  0xc3   : > { %v1346_v1 = vpop.permute.xlu1 %399 }
  0xc4   : > { %v554_v54 = vmul.f32 %v438_v23, %v438_v23 }
  0xc5   : > { %v1348_v2 = vpop.permute.xlu0 %407 }
  0xc7   : > { %v1350_v3 = vpop.permute.xlu1 %403 }
  0xc9   : > { %v1353_v5 = vpop.permute.xlu0 %415 }
  0xcc   : > { %v448_v7 = vpop.permute.xlu1 %447 }
  0xcd   : > { %v514_v11 = vsub.f32 %v448_v7, %v1356_v6  ;;  %v567_v7 = vadd.f32 %v551_v43, %v535_v29  ;;  %v439_v43 = vsub.f32 %v1346_v1, %v1324_v34 }
  0xce   : > { %v452_v10 = vpop.permute.xlu0 %451 }
  0xcf   : > { %v578_v21 = vmul.f32 %v514_v11, %v514_v11  ;;  %v515_v26 = vsub.f32 %v452_v10, %v1356_v6 }
  0xd0   : > { %v456_v14 = vpop.permute.xlu1 %455 }
  0xd1   : > { %v516_v24 = vsub.f32 %v456_v14, %v1356_v6  ;;  %v1373_v47 = vadd.f32 %v578_v21, %v562_v38  ;;  %v579_v55 = vmul.f32 %v515_v26, %v515_v26  ;;  %v565_v21 = vadd.f32 %v549_v4, %v533_v27 }
  0xd2   : > { %v464_v20 = vpop.permute.xlu0 %463  ;;  %v357_v4 = vsub.f32 %v1344_v63, %v1318_v30 }
  0xd3   : > { %v518_v25 = vsub.f32 %v464_v20, %v1356_v6  ;;  %v580_v48 = vmul.f32 %v516_v24, %v516_v24  ;;  %v1391_v15 = vadd.f32 %v579_v55, %v1334_v45  ;;  %v569_v24 = vadd.f32 %v553_v8, %v537_v13 }
  0xd4   : > { %v460_v33 = vpop.permute.xlu1 %459  ;;  %v555_v55 = vmul.f32 %v439_v43, %v439_v43 }
  0xd5   : > { %v582_v39 = vmul.f32 %v518_v25, %v518_v25  ;;  %v517_v56 = vsub.f32 %v460_v33, %v1356_v6  ;;  %v1385_v10 = vadd.f32 %v580_v48, %v1339_v52  ;;  %v358_v48 = vsub.f32 %v1331_v42, %v1318_v30 }
  0xd6   : > { %v472_v46 = vpop.permute.xlu0 %471 }
  0xd7   : > { %v1375_v50 = vadd.f32 %v582_v39, %v566_v57  ;;  %v520_v51 = vsub.f32 %v472_v46, %v1356_v6  ;;  %v538_v57 = vmul.f32 %v354_v41, %v354_v41  ;;  %v581_v16 = vmul.f32 %v517_v56, %v517_v56 }
  0xd8   : > { %v468_v58 = vpop.permute.xlu1 %467  ;;  %v440_v46 = vsub.f32 %v1350_v3, %v1324_v34  ;;  %v441_v3 = vsub.f32 %v1348_v2, %v1324_v34 }
  0xd9   : > { %v610_v60 = vmin.f32 %v1373_v47, %v1375_v50  ;;  %v584_v62 = vmul.f32 %v520_v51, %v520_v51  ;;  %v519_v0 = vsub.f32 %v468_v58, %v1356_v6  ;;  %v570_v14 = vadd.f32 %v554_v54, %v538_v57 }
  0xda   : > { %v480_v9 = vpop.permute.xlu0 %479  ;;  %v1402_v45 = vadd.f32 %v581_v16, %v565_v21  ;;  %v356_v51 = vsub.f32 %v1342_v61, %v1318_v30  ;;  %v361_v54 = vsub.f32 %v1337_v49, %v1318_v30  ;;  %v443_v61 = vsub.f32 %v1353_v5, %v1324_v34 }
  0xdb   : > { %v1387_v31 = vadd.f32 %v584_v62, %v568_v59  ;;  %v583_v11 = vmul.f32 %v519_v0, %v519_v0  ;;  %v522_v12 = vsub.f32 %v480_v9, %v1356_v6  ;;  %v556_v59 = vmul.f32 %v440_v46, %v440_v46 }
  0xdc   : > { %v476_v17 = vpop.permute.xlu1 %475  ;;  %v540_v0 = vmul.f32 %v356_v51, %v356_v51  ;;  %v545_v2 = vmul.f32 %v361_v54, %v361_v54  ;;  %v571_v9 = vadd.f32 %v555_v55, %v539_v35  ;;  %v557_v13 = vmul.f32 %v441_v3, %v441_v3 }
  0xdd   : > { %v612_v18 = vmin.f32 %v1385_v10, %v1387_v31  ;;  %v1395_v19 = vadd.f32 %v583_v11, %v567_v7  ;;  %v586_v20 = vmul.f32 %v522_v12, %v522_v12  ;;  %v521_v52 = vsub.f32 %v476_v17, %v1356_v6 }
  0xde   : > { %v492_v40 = vpop.permute.xlu0 %491 }
  0xdf   : > { %v611_v25 = vmin.f32 %v1391_v15, %v1395_v19  ;;  %v1400_v29 = vadd.f32 %v586_v20, %v570_v14  ;;  %v585_v23 = vmul.f32 %v521_v52, %v521_v52  ;;  %v525_v57 = vsub.f32 %v492_v40, %v1356_v6 }
  0xe0   : > { %v572_v14 = vadd.f32 %v556_v59, %v540_v0  ;;  %v559_v20 = vmul.f32 %v443_v61, %v443_v61 }
  0xe1   : > { %v1405_v26 = vmin.f32 %v610_v60, %v1400_v29  ;;  %v1407_v33 = vadd.f32 %v585_v23, %v569_v24  ;;  %v330_v37 = vpop.permute.xlu1 %329  ;;  %v542_v60 = vmul.f32 %v358_v48, %v358_v48  ;;  %v541_v24 = vmul.f32 %v357_v4, %v357_v4 }
  0xe2   : > { %v359_v56 = vsub.f32 %v330_v37, %v1318_v30  ;;  %v500_v1 = vpop.permute.xlu0 %499  ;;  %v589_v23 = vmul.f32 %v525_v57, %v525_v57 }
  0xe3   : > { %v613_v27 = vmin.f32 %v1402_v45, %v1407_v33  ;;  %v527_v7 = vsub.f32 %v500_v1, %v1356_v6  ;;  %v573_v48 = vadd.f32 %v557_v13, %v541_v24  ;;  %v1477_v13 = vadd.s32 112, %v1308_v22 }
  0xe4   : > { %v543_v11 = vmul.f32 %v359_v56, %v359_v56  ;;  %v1500_v24 = vadd.s32 72, %v1308_v22 }
  0xe5   : > { %v335_v32 = vpop.permute.xlu1 %334  ;;  %v591_v37 = vmul.f32 %v527_v7, %v527_v7  ;;  %v1450_v54 = vadd.f32 %v589_v23, %v573_v48  ;;  %v1508_v23 = vadd.s32 88, %v1308_v22 }
  0xe6   : > { %v508_v16 = vpop.permute.xlu0 %507 }
  0xe7   : > { %v529_v43 = vsub.f32 %v508_v16, %v1356_v6  ;;  %v617_v61 = vmin.f32 %v613_v27, %v1450_v54  ;;  %v1474_v27 = vadd.s32 80, %v1308_v22  ;;  %v1485_v16 = vadd.s32 24, %v1308_v22 }
  0xea   : > { %v412_v38 = vpop.permute.xlu1 %411 }
  0xeb   : > { %v442_v42 = vsub.f32 %v412_v38, %v1324_v34  ;;  %v360_v38 = vsub.f32 %v335_v32, %v1318_v30 }
  0xed   : > { %v558_v5 = vmul.f32 %v442_v42, %v442_v42  ;;  %v544_v55 = vmul.f32 %v360_v38, %v360_v38 }
  0xee   : > { %v420_v39 = vpop.permute.xlu1 %419 }
  0xef   : > { %v444_v17 = vsub.f32 %v420_v39, %v1324_v34  ;;  %v574_v51 = vadd.f32 %v558_v5, %v542_v60  ;;  %v1482_v5 = vadd.s32 8, %v1308_v22 }
  0xf2   : > { %v424_v41 = vpop.permute.xlu1 %423 }
  0xf3   : > { %v445_v62 = vsub.f32 %v424_v41, %v1324_v34  ;;  %v575_v41 = vadd.f32 %v559_v20, %v543_v11  ;;  %v560_v34 = vmul.f32 %v444_v17, %v444_v17  ;;  %v1488_v17 = vadd.s32 32, %v1308_v22 }
  0xf4   : > { %v1491_v20 = vadd.s32 40, %v1308_v22 }
  0xf5   : > { %v561_v52 = vmul.f32 %v445_v62, %v445_v62  ;;  %v1452_v1 = vadd.f32 %v591_v37, %v575_v41  ;;  %v576_v59 = vadd.f32 %v560_v34, %v544_v55  ;;  %v1530_v41 = vadd.s32 104, %v1308_v22 }
  0xf7   : > { %v484_v53 = vpop.permute.xlu1 %483  ;;  %v577_v39 = vadd.f32 %v561_v52, %v545_v2  ;;  %v1494_v52 = vadd.s32 56, %v1308_v22 }
  0xf8   : > { %v523_v58 = vsub.f32 %v484_v53, %v1356_v6 }
  0xfa   : > { %v587_v49 = vmul.f32 %v523_v58, %v523_v58  ;;  %v593_v58 = vmul.f32 %v529_v43, %v529_v43 }
  0xfb   : > { %v488_v8 = vpop.permute.xlu1 %487 }
  0xfc   : > { %v524_v12 = vsub.f32 %v488_v8, %v1356_v6  ;;  %v1438_v21 = vadd.f32 %v587_v49, %v571_v9  ;;  %v1457_v42 = vadd.f32 %v593_v58, %v577_v39  ;;  %v245_v39 = vadd.s32 120, %v1308_v22 }
  0xfe   : > { %v588_v63 = vmul.f32 %v524_v12, %v524_v12  ;;  %v615_v53 = vmin.f32 %v611_v25, %v1438_v21  ;;  %v621_v0 = vmin.f32 %v617_v61, %v1457_v42  ;;  %v1471_v12 = vadd.s32 48, %v1308_v22 }
  0xff   : > { %v496_v40 = vpop.permute.xlu1 %495 }
 0x100   : > { %v604_v44 = vadd.f32 %v588_v63, %v572_v14  ;;  %v526_v46 = vsub.f32 %v496_v40, %v1356_v6  ;;  %v619_v25 = vmin.f32 %v615_v53, %v1452_v1  ;;  %v1497_v63 = vadd.s32 64, %v1308_v22 }
 0x102   : > { %v616_v30 = vmin.f32 %v612_v18, %v604_v44  ;;  %v590_v32 = vmul.f32 %v526_v46, %v526_v46 }
 0x103   : > { %v504_v56 = vpop.permute.xlu1 %503 }
 0x104   : > { %v1454_v35 = vadd.f32 %v590_v32, %v574_v51  ;;  %v528_v3 = vsub.f32 %v504_v56, %v1356_v6 }
 0x106   : > { %v618_v18 = vmin.f32 %v1405_v26, %v1454_v35  ;;  %v592_v60 = vmul.f32 %v528_v3, %v528_v3  ;;  %v1468_v26 = vadd.s32 16, %v1308_v22 }
 0x108   : > { %v622_v62 = vmin.f32 %v618_v18, %v619_v25  ;;  %v608_v49 = vadd.f32 %v592_v60, %v576_v59 }
 0x10a   : > { %v620_v4 = vmin.f32 %v616_v30, %v608_v49 }
 0x10c   : > { %v623_v6 = vmin.f32 %v620_v4, %v621_v0  ;;  %v709_v0 = vsub.s32 3, %v1308_v22 }
 0x10e   : > { %v624_v57 = vmin.f32 %v622_v62, %v623_v6 }
 0x110   : > { %v625_v7 = vrot.slane %v624_v57, 4 }
 0x112   : > { %v626_v8 = vmin.f32 %v624_v57, %v625_v7 }
 0x114   : > { %v627_v2 = vrot.slane %v626_v8, 2 }
 0x116   : > { %v628_v9 = vmin.f32 %v626_v8, %v627_v2  ;;  %v1200_v8 = vmov 1.0  }
 0x118   : > { %v629_v11 = vrot.slane %v628_v9, 1 }
 0x11a   : > { %v1479_v14 = vmin.f32 %v628_v9, %v629_v11 }
 0x11c   : > { %vm633_vm1 = vcmp.eq.f32.partialorder %v1385_v10, %v1479_v14  ;;  %vm637_vm2 = vcmp.eq.f32.partialorder %v1387_v31, %v1479_v14  ;;  %vm641_vm3 = vcmp.eq.f32.partialorder %v604_v44, %v1479_v14  ;;  %vm645_vm4 = vcmp.eq.f32.partialorder %v608_v49, %v1479_v14 }
 0x11d   : > { %v649_v37 = vsel %vm633_vm1, %v1468_v26, 128  ;;  %v653_v38 = vsel %vm637_vm2, %v1471_v12, 128  ;;  %v657_v40 = vsel %vm641_vm3, %v1474_v27, 128  ;;  %vm631_vm6 = vcmp.eq.f32.partialorder %v1373_v47, %v1479_v14 }
 0x11e   : > { %vm667_vm5 = vcmp.lt.s32.totalorder %v649_v37, %v653_v38  ;;  %vm632_vm7 = vcmp.eq.f32.partialorder %v1391_v15, %v1479_v14  ;;  %vm634_vm8 = vcmp.eq.f32.partialorder %v1402_v45, %v1479_v14  ;;  %vm635_vm9 = vcmp.eq.f32.partialorder %v1375_v50, %v1479_v14 }
 0x11f   : > { %v668_v10 = vsel %vm667_vm5, %v649_v37, %v653_v38  ;;  %vm636_vm10 = vcmp.eq.f32.partialorder %v1395_v19, %v1479_v14  ;;  %vm638_vm11 = vcmp.eq.f32.partialorder %v1407_v33, %v1479_v14  ;;  %v1527_v31 = vadd.s32 96, %v1308_v22 }
 0x120   : > { %vm675_vm12 = vcmp.lt.s32.totalorder %v668_v10, %v657_v40  ;;  %vm639_vm13 = vcmp.eq.f32.partialorder %v1400_v29, %v1479_v14  ;;  %v661_v43 = vsel %vm645_vm4, %v1477_v13, 128  ;;  %vm640_vm14 = vcmp.eq.f32.partialorder %v1438_v21, %v1479_v14 }
 0x121   : > { %v676_v44 = vsel %vm675_vm12, %v668_v10, %v657_v40  ;;  %vm642_vm15 = vcmp.eq.f32.partialorder %v1450_v54, %v1479_v14  ;;  %v647_v46 = vsel %vm631_vm6, %v1308_v22, 128  ;;  %v648_v48 = vsel %vm632_vm7, %v1482_v5, 128 }
 0x122   : > { %vm683_vm0 = vcmp.lt.s32.totalorder %v676_v44, %v661_v43  ;;  %v650_v51 = vsel %vm634_vm8, %v1485_v16, 128  ;;  %v651_v34 = vsel %vm635_vm9, %v1488_v17, 128  ;;  %v652_v47 = vsel %vm636_vm10, %v1491_v20, 128 }
 0x123   : > { %v684_v21 = vsel %vm683_vm0, %v676_v44, %v661_v43  ;;  %v654_v15 = vsel %vm638_vm11, %v1494_v52, 128  ;;  %vm643_vm1 = vcmp.eq.f32.partialorder %v1454_v35, %v1479_v14  ;;  %vm644_vm2 = vcmp.eq.f32.partialorder %v1452_v1, %v1479_v14 }
 0x124   : > { %vm646_vm3 = vcmp.eq.f32.partialorder %v1457_v42, %v1479_v14  ;;  %v655_v50 = vsel %vm639_vm13, %v1497_v63, 128  ;;  %v656_v19 = vsel %vm640_vm14, %v1500_v24, 128  ;;  %vm663_vm4 = vcmp.lt.s32.totalorder %v647_v46, %v651_v34 }
 0x125   : > { %vm665_vm5 = vcmp.lt.s32.totalorder %v648_v48, %v652_v47  ;;  %v658_v45 = vsel %vm642_vm15, %v1508_v23, 128  ;;  %v664_v33 = vsel %vm663_vm4, %v647_v46, %v651_v34  ;;  %vm669_vm6 = vcmp.lt.s32.totalorder %v650_v51, %v654_v15 }
 0x126   : > { %v666_v53 = vsel %vm665_vm5, %v648_v48, %v652_v47  ;;  %v659_v30 = vsel %vm643_vm1, %v1527_v31, 128  ;;  %v670_v32 = vsel %vm669_vm6, %v650_v51, %v654_v15  ;;  %vm671_vm7 = vcmp.lt.s32.totalorder %v664_v33, %v655_v50 }
 0x127   : > { %vm673_vm8 = vcmp.lt.s32.totalorder %v666_v53, %v656_v19  ;;  %v660_v29 = vsel %vm644_vm2, %v1530_v41, 128  ;;  %v672_v55 = vsel %vm671_vm7, %v664_v33, %v655_v50  ;;  %vm677_vm9 = vcmp.lt.s32.totalorder %v670_v32, %v658_v45 }
 0x128   : > { %v674_v56 = vsel %vm673_vm8, %v666_v53, %v656_v19  ;;  %v662_v1 = vsel %vm646_vm3, %v245_v39, 128  ;;  %v678_v58 = vsel %vm677_vm9, %v670_v32, %v658_v45  ;;  %vm679_vm10 = vcmp.lt.s32.totalorder %v672_v55, %v659_v30 }
 0x129   : > { %vm681_vm11 = vcmp.lt.s32.totalorder %v674_v56, %v660_v29  ;;  %v680_v54 = vsel %vm679_vm10, %v672_v55, %v659_v30  ;;  %vm685_vm12 = vcmp.lt.s32.totalorder %v678_v58, %v662_v1  ;;  %vm704_vm3 = vcmp.gt.f32.partialorder %v1314_v28, 0.0  ;;  %v706_v28 = vld [vmem:[%s227_s11] sm:$0xff] }
 0x12a   : > { %v682_v35 = vsel %vm681_vm11, %v674_v56, %v660_v29  ;;  %v686_v3 = vsel %vm685_vm12, %v678_v58, %v662_v1  ;;  %vm702_vm4 = vcmp.lt.f32.partialorder %v1479_v14, 3e+38 }
 0x12b   : > { %vm687_vm13 = vcmp.lt.s32.totalorder %v680_v54, %v682_v35  ;;  %vm689_vm14 = vcmp.lt.s32.totalorder %v684_v21, %v686_v3 }
 0x12c   : > { %v688_v59 = vsel %vm687_vm13, %v680_v54, %v682_v35  ;;  %v690_v25 = vsel %vm689_vm14, %v684_v21, %v686_v3 }
 0x12d   : > { %vm691_vm15 = vcmp.lt.s32.totalorder %v688_v59, %v690_v25 }
 0x12e   : > { %v692_v18 = vsel %vm691_vm15, %v688_v59, %v690_v25 }
 0x12f   : > { %v693_v60 = vrot.slane %v692_v18, 4 }
 0x131   : > { %vm694_vm0 = vcmp.lt.s32.totalorder %v692_v18, %v693_v60 }
 0x132   : > { %v695_v61 = vsel %vm694_vm0, %v692_v18, %v693_v60 }
 0x133   : > { %v696_v62 = vrot.slane %v695_v61, 2 }
 0x135   : > { %vm697_vm1 = vcmp.lt.s32.totalorder %v695_v61, %v696_v62 }
 0x136   : > { %v698_v42 = vsel %vm697_vm1, %v695_v61, %v696_v62 }
 0x137   : > { %v699_v49 = vrot.slane %v698_v42, 1 }
 0x139   : > { %vm700_vm2 = vcmp.lt.s32.totalorder %v698_v42, %v699_v49 }
 0x13a   : > { %v701_v4 = vsel %vm700_vm2, %v698_v42, %v699_v49 }
 0x13b   : > { %v703_v6 = vsel %vm702_vm4, %v701_v4, 0 }
 0x13c   : > { %v705_v57 = vsel %vm704_vm3, %v703_v6, 0 }
 0x13d   : > { %v710_v7 = vrot.slane %v705_v57, %v709_v0 }
 0x13f   : > { %vm726_vm5 = vcmp.eq.s32.totalorder %v245_v39, %v710_v7  ;;  %vm725_vm6 = vcmp.eq.s32.totalorder %v1477_v13, %v710_v7  ;;  %vm724_vm7 = vcmp.eq.s32.totalorder %v1530_v41, %v710_v7  ;;  %vm723_vm8 = vcmp.eq.s32.totalorder %v1527_v31, %v710_v7 }
 0x140   : > { %1011 = vmatpush3.msk.msra.mxu0 %vm726_vm5, %v1200_v8  ;;  %vm722_vm9 = vcmp.eq.s32.totalorder %v1508_v23, %v710_v7  ;;  %vm721_vm10 = vcmp.eq.s32.totalorder %v1474_v27, %v710_v7  ;;  %vm720_vm11 = vcmp.eq.s32.totalorder %v1500_v24, %v710_v7  ;;  %vm719_vm12 = vcmp.eq.s32.totalorder %v1497_v63, %v710_v7 }
 0x141   : > { %1012 = vmatprep.subr.mxu0 %v1198_v36  ;;  %vm718_vm13 = vcmp.eq.s32.totalorder %v1494_v52, %v710_v7  ;;  %vm717_vm14 = vcmp.eq.s32.totalorder %v1471_v12, %v710_v7  ;;  %vm716_vm15 = vcmp.eq.s32.totalorder %v1491_v20, %v710_v7  ;;  %vm715_vm0 = vcmp.eq.s32.totalorder %v1488_v17, %v710_v7 }
 0x142   : > { %1013 = vmatpush3.msk.msra.mxu0 %vm725_vm6, %v1200_v8  ;;  %vm714_vm1 = vcmp.eq.s32.totalorder %v1485_v16, %v710_v7  ;;  %vm713_vm2 = vcmp.eq.s32.totalorder %v1468_v26, %v710_v7  ;;  %vm712_vm3 = vcmp.eq.s32.totalorder %v1482_v5, %v710_v7  ;;  %vm711_vm4 = vcmp.eq.s32.totalorder %v1308_v22, %v710_v7 }
 0x143   : > { %1014 = vmatprep.subr.mxu0 %v1198_v36 }
 0x144   : > { %1015 = vmatpush3.msk.msra.mxu0 %vm724_vm7, %v1200_v8 }
 0x145   : > { %1016 = vmatprep.subr.mxu0 %v1198_v36 }
 0x146   : > { %1017 = vmatpush3.msk.msra.mxu0 %vm723_vm8, %v1200_v8 }
 0x147   : > { %1018 = vmatprep.subr.mxu0 %v1198_v36 }
 0x148   : > { %1019 = vmatpush3.msk.msra.mxu0 %vm722_vm9, %v1200_v8 }
 0x149   : > { %1020 = vmatprep.subr.mxu0 %v1198_v36 }
 0x14a   : > { %1021 = vmatpush3.msk.msra.mxu0 %vm721_vm10, %v1200_v8 }
 0x14b   : > { %1022 = vmatprep.subr.mxu0 %v1198_v36 }
 0x14c   : > { %1023 = vmatpush3.msk.msra.mxu0 %vm720_vm11, %v1200_v8 }
 0x14d   : > { %1024 = vmatprep.subr.mxu0 %v1198_v36 }
 0x14e   : > { %1025 = vmatpush3.msk.msra.mxu0 %vm719_vm12, %v1200_v8 }
 0x14f   : > { %1026 = vmatprep.subr.mxu0 %v1198_v36 }
 0x150   : > { %1027 = vmatpush3.msk.msra.mxu0 %vm718_vm13, %v1200_v8 }
 0x151   : > { %1028 = vmatprep.subr.mxu0 %v1198_v36 }
 0x152   : > { %1029 = vmatpush3.msk.msra.mxu0 %vm717_vm14, %v1200_v8 }
 0x153   : > { %1030 = vmatprep.subr.mxu0 %v1198_v36 }
 0x154   : > { %1031 = vmatpush3.msk.msra.mxu0 %vm716_vm15, %v1200_v8 }
 0x155   : > { %1032 = vmatprep.subr.mxu0 %v1198_v36 }
 0x156   : > { %1033 = vmatpush3.msk.msra.mxu0 %vm715_vm0, %v1200_v8 }
 0x157   : > { %1034 = vmatprep.subr.mxu0 %v1198_v36 }
 0x158   : > { %1035 = vmatpush3.msk.msra.mxu0 %vm714_vm1, %v1200_v8 }
 0x159   : > { %1036 = vmatprep.subr.mxu0 %v1198_v36 }
 0x15a   : > { %1037 = vmatpush3.msk.msra.mxu0 %vm713_vm2, %v1200_v8 }
 0x15b   : > { %1038 = vmatprep.subr.mxu0 %v1198_v36 }
 0x15c   : > { %1039 = vmatpush3.msk.msra.mxu0 %vm712_vm3, %v1200_v8 }
 0x15d   : > { %1040 = vmatprep.subr.mxu0 %v1198_v36 }
 0x15e   : > { %1041 = vmatpush3.msk.msra.mxu0 %vm711_vm4, %v1200_v8 }
 0x15f   : > { %1043 = vmatmul.mubr.f32.vlgmr.msra.gmra.mxu0 %v706_v28 }
 0x21f   : > { %v825_v36 = vpop.f32.mrf.mxu0 }
 0x220   : > { %829 = vst [vmem:[%s211_s21] sm:$0xff] %v825_v36 }
 0x221   : > { %v1044_v22 = vpop.f32.mrf.mxu0 }
 0x222   : > { %1130 = shalt.err (!%p1127_p5)
}
 0x223   : > { %s1131_s7 = scalar_lea.hbm %s1630_s29, 128  ;;  %s1135_s10 = scalar_lea.hbm %s1677_s3, 256 }
 0x224   : > { %p1132_p6 = scmp.ne.s32.totalorder %s1630_s29, %s1131_s7  ;;  %p1136_p10 = scmp.lt.s32.totalorder %s1630_s29, %s1677_s3 }
 0x225   : > { %p1137_p11 = scmp.lt.s32.totalorder %s1135_s10, %s1131_s7 }
 0x226   : > { %p1133_p7 = pnand %p1132_p6, %p1262_p4 }
 0x227   : > { %p1138_p12 = por %p1137_p11, %p1136_p10 }
 0x228   : > { %p1134_p9 = pneg %p1133_p7 }
 0x22a   : > { %p1139_p13 = pnand %p1138_p12, %p1134_p9 }
 0x22c   : > { %1142 = shalt.err (!%p1139_p13)
}
 0x22d   : > { %1045 = dma.vmem_to_hbm [thread:$0]  (%p1262_p4), %s1625_s23, 128, %s1630_s29, %s831_s30  }
 0x22e PF: > { %p1051_p0 = scmp.ge.s32.totalorder %s1193_s17, 2  ;;  %s857_s19 = sand.u32 1, %s1173_s12  }
 0x22f   : > { %s858_s21 = scalar_lea.sflag [#allocation3], %s857_s19 }
 0x230   : > { %p1048_p1 = pnand %p1051_p0, %p1269_p8 }
 0x232   : > { %p1049_p2 = pneg %p1048_p1 }
 0x234   : > { %1168 = dma.done.wait (%p1049_p2), %s858_s21, 128  }
 0x235   : > { %1170 = vsyncadd (%p1049_p2), %s858_s21, 4294967168  ;;  %s16_s17 = sadd.s32 1, %s1193_s17   ;;  %s1680_s12 = smov %s1177_s13 }
 0x236   : > { %p13_p3 = scmp.ge.s32.totalorder %s16_s17, 4   ;;  %s1681_s13 = smov %s1181_s14 }
 0x237   : > { %s1682_s14 = smov %s1275_s25  ;;  %s1683_s15 = smov %s1189_s16 }
 0x238   : > { %s1684_s16 = smov %s1686_s20  ;;  %15 = sbr.rel (!%p13_p3) target bundleno = 4 (0x4), region = 73 }
 0x23d   :  { %863 = vsyncpa [#allocation3], 1 }
 0x23e   :  { %865 = vsyncpa [#allocation3 + $0x1], 1 }

</bundles_post_ra>
